<compile_context>
chip_gen: v5e
topology: v5e:2x2
jax: 0.10.0
libtpu: 0.0.40
codegen_flags: <defaults>
</compile_context>

<pallas_src>
import functools

import jax
import jax.numpy as jnp
from jax.experimental import pallas as pl
from jax.experimental.pallas import tpu as pltpu


# ----------------------------------------------------------------------------
# Fused kernel (one batch element per grid step)
# ----------------------------------------------------------------------------
def _lrp_final_kernel(y_ref, xi_ref, wt_ref,
                      p_ak_ref, g2_ak_ref, g1_ak_ref,
                      p_aj_ref, g2_aj_ref, g1_aj_ref,
                      p_out_ref, g2_out_ref, g1_out_ref,
                      *, e, c1, c2, pool_scale):
    """epsilon-LRP through classifier + {GlobalPool, Sum2, Sum1}, all in VMEM."""

    def stab(a):
        # epsilon stabiliser; sign(0) treated as +1 (documented convention).
        return a + e * jnp.where(a >= 0, 1.0, -1.0).astype(a.dtype)

    y = y_ref[0]                      # (1, K)  classifier output
    s_y = y / stab(y)                 # (1, K)  diag(LRPOutput(y)) / stab(y)

    def redistribute(lo, c, ak_ref, aj_ref, out_ref, scale):
        # Transposed dense relevance for this channel slice (diagonal r0 exploit):
        #   rT[j, k] = XI0[lo+j] * W[k, lo+j] * y[k]/stab(y[k])        -> (C, K)
        r_t = xi_ref[0, lo:lo + c, :] * wt_ref[lo:lo + c, :] * s_y
        # Redistribution factor; pool scale folded into the tiny (C,1) term.
        s_t = r_t * (scale / stab(ak_ref[0]))                          # (C, K)
        aj = aj_ref[0]                                                 # (C, HW)
        for k in range(s_t.shape[1]):                                  # static unroll over classes
            out_ref[0, k] = s_t[:, k:k + 1] * aj                       # (C,1) lane-bcast * (C,HW)

    redistribute(0, c1, g1_ak_ref, g1_aj_ref, g1_out_ref, 1.0)          # Sum1
    redistribute(c1, c2, g2_ak_ref, g2_aj_ref, g2_out_ref, 1.0)         # Sum2
    cp = p_ak_ref.shape[1]
    redistribute(c1 + c2, cp, p_ak_ref, p_aj_ref, p_out_ref, pool_scale)  # GlobalPool


# ----------------------------------------------------------------------------
# Wrapper (mirrors LRPFinalLayers.forward(y, X, XI))
# ----------------------------------------------------------------------------
def lrp_final_layers(y, XI0, conv5, pool_out, gate2_in, gate2_out,
                     gate1_in, gate1_out, W, e):
    B, K = y.shape
    F = XI0.shape[1]
    C1, H1, W1 = gate1_in.shape[1:]
    C2, H2, W2 = gate2_in.shape[1:]
    Cp, Hp, Wp = conv5.shape[1:]
    dt = y.dtype

    # Cheap host-side re-layouts (pure reshapes + one tiny weight transpose):
    # channels go on sublanes, classes / spatial go on lanes.
    y3 = y[:, None, :]                           # (B, 1, K)
    xi3 = XI0[:, :, None]                        # (B, F, 1)
    wt = W.T                                     # (F, K)
    p_ak = pool_out.reshape(B, Cp, 1)            # (B, Cp, 1)
    g2_ak = gate2_out[:, :, None]                # (B, C2, 1)
    g1_ak = gate1_out[:, :, None]                # (B, C1, 1)
    p_aj = conv5.reshape(B, Cp, Hp * Wp)         # (B, Cp, HWp)
    g2_aj = gate2_in.reshape(B, C2, H2 * W2)     # (B, C2, HW2)
    g1_aj = gate1_in.reshape(B, C1, H1 * W1)     # (B, C1, HW1)

    kernel = functools.partial(_lrp_final_kernel, e=float(e), c1=C1, c2=C2,
                               pool_scale=1.0 / float(Hp * Wp))

    rO, rA2, rA1 = pl.pallas_call(
        kernel,
        out_shape=(
            jax.ShapeDtypeStruct((B, K, Cp, Hp * Wp), dt),
            jax.ShapeDtypeStruct((B, K, C2, H2 * W2), dt),
            jax.ShapeDtypeStruct((B, K, C1, H1 * W1), dt),
        ),
        grid=(B,),
        in_specs=[
            pl.BlockSpec((1, 1, K), lambda b: (b, 0, 0)),
            pl.BlockSpec((1, F, 1), lambda b: (b, 0, 0)),
            pl.BlockSpec((F, K), lambda b: (0, 0)),          # constant block -> stays resident
            pl.BlockSpec((1, Cp, 1), lambda b: (b, 0, 0)),
            pl.BlockSpec((1, C2, 1), lambda b: (b, 0, 0)),
            pl.BlockSpec((1, C1, 1), lambda b: (b, 0, 0)),
            pl.BlockSpec((1, Cp, Hp * Wp), lambda b: (b, 0, 0)),
            pl.BlockSpec((1, C2, H2 * W2), lambda b: (b, 0, 0)),
            pl.BlockSpec((1, C1, H1 * W1), lambda b: (b, 0, 0)),
        ],
        out_specs=(
            pl.BlockSpec((1, K, Cp, Hp * Wp), lambda b: (b, 0, 0, 0)),
            pl.BlockSpec((1, K, C2, H2 * W2), lambda b: (b, 0, 0, 0)),
            pl.BlockSpec((1, K, C1, H1 * W1), lambda b: (b, 0, 0, 0)),
        ),
        compiler_params=pltpu.CompilerParams(
            dimension_semantics=("parallel",)),
    )(y3, xi3, wt, p_ak, g2_ak, g1_ak, p_aj, g2_aj, g1_aj)

    return (rO.reshape(B, K, Cp, Hp, Wp),
            rA2.reshape(B, K, C2, H2, W2),
            rA1.reshape(B, K, C1, H1, W1))


# ----------------------------------------------------------------------------
# Pure-JAX reference (keeps the diagonal-r0 assumption honest)
# ----------------------------------------------------------------------------
def _ref(y, XI0, conv5, pool_out, gate2_in, gate2_out, gate1_in, gate1_out, W, e):
    B, K = y.shape
    C1, C2 = gate1_in.shape[1], gate2_in.shape[1]
    Hp, Wp = conv5.shape[2], conv5.shape[3]
    stab = lambda a: a + e * jnp.where(a >= 0, 1.0, -1.0)
    r0 = jnp.eye(K)[None] * y[:, None, :]
    r = XI0[:, None, :] * jnp.einsum('bck,kf->bcf', r0 / stab(y)[:, None, :], W)
    rO = (conv5 / (Hp * Wp))[:, None] * (r[:, :, C1 + C2:] /
          stab(pool_out[:, :, 0, 0])[:, None])[:, :, :, None, None]
    rA2 = gate2_in[:, None] * (r[:, :, C1:C1 + C2] /
          stab(gate2_out)[:, None])[:, :, :, None, None]
    rA1 = gate1_in[:, None] * (r[:, :, :C1] /
          stab(gate1_out)[:, None])[:, :, :, None, None]
    return rO, rA2, rA1


# ----------------------------------------------------------------------------
if __name__ == "__main__":
    key = jax.random.PRNGKey(0)
    ks = jax.random.split(key, 6)

    B, K = 2, 4                       # batch, num_classes
    C1, H1, W1 = 4, 8, 8              # gate1 attended features
    C2, H2, W2 = 4, 4, 4              # gate2 attended features
    Cp, Hp, Wp = 8, 4, 4              # conv5 features feeding the global pool
    F = C1 + C2 + Cp                  # classifier input size
    e = 1e-2

    # Deterministic synthetic activations (post-ReLU style, NCHW).
    gate1_in = jax.nn.relu(jax.random.normal(ks[0], (B, C1, H1, W1), jnp.float32))
    gate2_in = jax.nn.relu(jax.random.normal(ks[1], (B, C2, H2, W2), jnp.float32))
    conv5 = jax.nn.relu(jax.random.normal(ks[2], (B, Cp, Hp, Wp), jnp.float32))

    gate1_out = gate1_in.sum(axis=(2, 3))                 # gateSum1 output (B, C1)
    gate2_out = gate2_in.sum(axis=(2, 3))                 # gateSum2 output (B, C2)
    pool_out = conv5.mean(axis=(2, 3), keepdims=True)     # adpPool output (B, Cp, 1, 1)

    # Classifier input XI[0] = concat([gate1, gate2, pooled conv5])
    XI0 = jnp.concatenate([gate1_out, gate2_out, pool_out[:, :, 0, 0]], axis=1)

    # Deterministic classifier parameters (shapes implied by the module).
    Wcls = 0.1 * jax.random.normal(ks[3], (K, F), jnp.float32)
    bcls = 0.01 * jax.random.normal(ks[4], (K,), jnp.float32)
    y = XI0 @ Wcls.T + bcls                                # classifier output (B, K)

    rOriginal, rAtt2, rAtt1 = lrp_final_layers(
        y, XI0, conv5, pool_out, gate2_in, gate2_out, gate1_in, gate1_out, Wcls, e)
    jax.block_until_ready((rOriginal, rAtt2, rAtt1))

    # Sanity check against a pure-JAX reference.
    refO, refA2, refA1 = _ref(
        y, XI0, conv5, pool_out, gate2_in, gate2_out, gate1_in, gate1_out, Wcls, e)
    assert rOriginal.shape == (B, K, Cp, Hp, Wp)
    assert rAtt2.shape == (B, K, C2, H2, W2)
    assert rAtt1.shape == (B, K, C1, H1, W1)
    for a, b in ((rOriginal, refO), (rAtt2, refA2), (rAtt1, refA1)):
        assert jnp.allclose(a, b, rtol=2e-2, atol=1e-3)

    print("KERNEL_OK")
</pallas_src>

<mosaic_0001>
module attributes {stable_mosaic.version = 11 : i64} {
  func.func @_lrp_final_kernel(%arg0: i32, %arg1: memref<1x1x4xf32, #tpu.memory_space<vmem>>, %arg2: memref<1x16x1xf32, #tpu.memory_space<vmem>>, %arg3: memref<16x4xf32, #tpu.memory_space<vmem>>, %arg4: memref<1x8x1xf32, #tpu.memory_space<vmem>>, %arg5: memref<1x4x1xf32, #tpu.memory_space<vmem>>, %arg6: memref<1x4x1xf32, #tpu.memory_space<vmem>>, %arg7: memref<1x8x16xf32, #tpu.memory_space<vmem>>, %arg8: memref<1x4x16xf32, #tpu.memory_space<vmem>>, %arg9: memref<1x4x64xf32, #tpu.memory_space<vmem>>, %arg10: memref<1x4x8x16xf32, #tpu.memory_space<vmem>>, %arg11: memref<1x4x4x16xf32, #tpu.memory_space<vmem>>, %arg12: memref<1x4x4x64xf32, #tpu.memory_space<vmem>>) attributes {dimension_semantics = [#tpu.dimension_semantics<parallel>], iteration_bounds = array<i64: 2>, scalar_prefetch = 0 : i64, scratch_operands = 0 : i64, tpu.core_type = #tpu.core_type<tc>, window_params = [{transform_indices = @transform_0, window_bounds = array<i64: 1, 1, 4>}, {transform_indices = @transform_1, window_bounds = array<i64: 1, 16, 1>}, {pipeline_mode = #tpu.pipeline_mode<synchronous>, transform_indices = @transform_2, window_bounds = array<i64: 16, 4>}, {transform_indices = @transform_3, window_bounds = array<i64: 1, 8, 1>}, {transform_indices = @transform_4, window_bounds = array<i64: 1, 4, 1>}, {transform_indices = @transform_5, window_bounds = array<i64: 1, 4, 1>}, {transform_indices = @transform_6, window_bounds = array<i64: 1, 8, 16>}, {transform_indices = @transform_7, window_bounds = array<i64: 1, 4, 16>}, {transform_indices = @transform_8, window_bounds = array<i64: 1, 4, 64>}, {transform_indices = @transform_9, window_bounds = array<i64: 1, 4, 8, 16>}, {transform_indices = @transform_10, window_bounds = array<i64: 1, 4, 4, 16>}, {transform_indices = @transform_11, window_bounds = array<i64: 1, 4, 4, 64>}]} {
    %c0 = arith.constant 0 : index
    %c0_0 = arith.constant 0 : index
    %c0_1 = arith.constant 0 : index
    %0 = vector.load %arg1[%c0, %c0_0, %c0_1] : memref<1x1x4xf32, #tpu.memory_space<vmem>>, vector<1x1x4xf32>
    %1 = vector.shape_cast %0 : vector<1x1x4xf32> to vector<1x4xf32>
    %cst = arith.constant 0.000000e+00 : f32
    %2 = vector.broadcast %cst : f32 to vector<1x4xf32>
    %3 = arith.cmpf oge, %1, %2 : vector<1x4xf32>
    %cst_2 = arith.constant 1.000000e+00 : f32
    %cst_3 = arith.constant -1.000000e+00 : f32
    %4 = vector.broadcast %cst_2 : f32 to vector<1x4xf32>
    %5 = vector.broadcast %cst_3 : f32 to vector<1x4xf32>
    %6 = arith.select %3, %4, %5 : vector<1x4xi1>, vector<1x4xf32>
    %cst_4 = arith.constant 0.00999999977 : f32
    %7 = vector.broadcast %cst_4 : f32 to vector<1x4xf32>
    %8 = arith.mulf %7, %6 : vector<1x4xf32>
    %9 = arith.addf %1, %8 : vector<1x4xf32>
    %10 = arith.divf %1, %9 : vector<1x4xf32>
    %c0_5 = arith.constant 0 : index
    %c0_6 = arith.constant 0 : index
    %c0_7 = arith.constant 0 : index
    %11 = vector.load %arg2[%c0_5, %c0_6, %c0_7] : memref<1x16x1xf32, #tpu.memory_space<vmem>>, vector<1x4x1xf32>
    %12 = vector.shape_cast %11 : vector<1x4x1xf32> to vector<4x1xf32>
    %c0_8 = arith.constant 0 : index
    %c0_9 = arith.constant 0 : index
    %13 = vector.load %arg3[%c0_8, %c0_9] : memref<16x4xf32, #tpu.memory_space<vmem>>, vector<4x4xf32>
    %14 = vector.broadcast %12 : vector<4x1xf32> to vector<4x4xf32>
    %15 = arith.mulf %14, %13 : vector<4x4xf32>
    %16 = vector.broadcast %10 : vector<1x4xf32> to vector<4x4xf32>
    %17 = arith.mulf %15, %16 : vector<4x4xf32>
    %c0_10 = arith.constant 0 : index
    %c0_11 = arith.constant 0 : index
    %c0_12 = arith.constant 0 : index
    %18 = vector.load %arg6[%c0_10, %c0_11, %c0_12] : memref<1x4x1xf32, #tpu.memory_space<vmem>>, vector<1x4x1xf32>
    %19 = vector.shape_cast %18 : vector<1x4x1xf32> to vector<4x1xf32>
    %cst_13 = arith.constant 0.000000e+00 : f32
    %20 = vector.broadcast %cst_13 : f32 to vector<4x1xf32>
    %21 = arith.cmpf oge, %19, %20 : vector<4x1xf32>
    %cst_14 = arith.constant 1.000000e+00 : f32
    %cst_15 = arith.constant -1.000000e+00 : f32
    %22 = vector.broadcast %cst_14 : f32 to vector<4x1xf32>
    %23 = vector.broadcast %cst_15 : f32 to vector<4x1xf32>
    %24 = arith.select %21, %22, %23 : vector<4x1xi1>, vector<4x1xf32>
    %cst_16 = arith.constant 0.00999999977 : f32
    %25 = vector.broadcast %cst_16 : f32 to vector<4x1xf32>
    %26 = arith.mulf %25, %24 : vector<4x1xf32>
    %27 = arith.addf %19, %26 : vector<4x1xf32>
    %cst_17 = arith.constant 1.000000e+00 : f32
    %28 = vector.broadcast %cst_17 : f32 to vector<4x1xf32>
    %29 = arith.divf %28, %27 : vector<4x1xf32>
    %30 = vector.broadcast %29 : vector<4x1xf32> to vector<4x4xf32>
    %31 = arith.mulf %17, %30 : vector<4x4xf32>
    %c0_18 = arith.constant 0 : index
    %c0_19 = arith.constant 0 : index
    %c0_20 = arith.constant 0 : index
    %32 = vector.load %arg9[%c0_18, %c0_19, %c0_20] : memref<1x4x64xf32, #tpu.memory_space<vmem>>, vector<1x4x64xf32>
    %33 = vector.shape_cast %32 : vector<1x4x64xf32> to vector<4x64xf32>
    %34 = vector.extract_strided_slice %31 {offsets = [0, 0], sizes = [4, 1], strides = [1, 1]} : vector<4x4xf32> to vector<4x1xf32>
    %35 = vector.broadcast %34 : vector<4x1xf32> to vector<4x64xf32>
    %36 = arith.mulf %35, %33 : vector<4x64xf32>
    %c0_21 = arith.constant 0 : index
    %c0_22 = arith.constant 0 : index
    %c0_23 = arith.constant 0 : index
    %c0_24 = arith.constant 0 : index
    %37 = vector.load %arg12[%c0_21, %c0_22, %c0_23, %c0_24] : memref<1x4x4x64xf32, #tpu.memory_space<vmem>>, vector<1x1x4x64xf32>
    %38 = vector.shape_cast %37 : vector<1x1x4x64xf32> to vector<4x64xf32>
    %39 = vector.shape_cast %36 : vector<4x64xf32> to vector<1x1x4x64xf32>
    tpu.vector_store %arg12[%c0_21, %c0_22, %c0_23, %c0_24], %39 {strides = array<i32>} : memref<1x4x4x64xf32, #tpu.memory_space<vmem>>, vector<1x1x4x64xf32>,
    %40 = vector.extract_strided_slice %31 {offsets = [0, 1], sizes = [4, 1], strides = [1, 1]} : vector<4x4xf32> to vector<4x1xf32>
    %41 = vector.broadcast %40 : vector<4x1xf32> to vector<4x64xf32>
    %42 = arith.mulf %41, %33 : vector<4x64xf32>
    %c0_25 = arith.constant 0 : index
    %c1 = arith.constant 1 : index
    %c0_26 = arith.constant 0 : index
    %c0_27 = arith.constant 0 : index
    %43 = vector.load %arg12[%c0_25, %c1, %c0_26, %c0_27] : memref<1x4x4x64xf32, #tpu.memory_space<vmem>>, vector<1x1x4x64xf32>
    %44 = vector.shape_cast %43 : vector<1x1x4x64xf32> to vector<4x64xf32>
    %45 = vector.shape_cast %42 : vector<4x64xf32> to vector<1x1x4x64xf32>
    tpu.vector_store %arg12[%c0_25, %c1, %c0_26, %c0_27], %45 {strides = array<i32>} : memref<1x4x4x64xf32, #tpu.memory_space<vmem>>, vector<1x1x4x64xf32>,
    %46 = vector.extract_strided_slice %31 {offsets = [0, 2], sizes = [4, 1], strides = [1, 1]} : vector<4x4xf32> to vector<4x1xf32>
    %47 = vector.broadcast %46 : vector<4x1xf32> to vector<4x64xf32>
    %48 = arith.mulf %47, %33 : vector<4x64xf32>
    %c0_28 = arith.constant 0 : index
    %c2 = arith.constant 2 : index
    %c0_29 = arith.constant 0 : index
    %c0_30 = arith.constant 0 : index
    %49 = vector.load %arg12[%c0_28, %c2, %c0_29, %c0_30] : memref<1x4x4x64xf32, #tpu.memory_space<vmem>>, vector<1x1x4x64xf32>
    %50 = vector.shape_cast %49 : vector<1x1x4x64xf32> to vector<4x64xf32>
    %51 = vector.shape_cast %48 : vector<4x64xf32> to vector<1x1x4x64xf32>
    tpu.vector_store %arg12[%c0_28, %c2, %c0_29, %c0_30], %51 {strides = array<i32>} : memref<1x4x4x64xf32, #tpu.memory_space<vmem>>, vector<1x1x4x64xf32>,
    %52 = vector.extract_strided_slice %31 {offsets = [0, 3], sizes = [4, 1], strides = [1, 1]} : vector<4x4xf32> to vector<4x1xf32>
    %53 = vector.broadcast %52 : vector<4x1xf32> to vector<4x64xf32>
    %54 = arith.mulf %53, %33 : vector<4x64xf32>
    %c0_31 = arith.constant 0 : index
    %c3 = arith.constant 3 : index
    %c0_32 = arith.constant 0 : index
    %c0_33 = arith.constant 0 : index
    %55 = vector.load %arg12[%c0_31, %c3, %c0_32, %c0_33] : memref<1x4x4x64xf32, #tpu.memory_space<vmem>>, vector<1x1x4x64xf32>
    %56 = vector.shape_cast %55 : vector<1x1x4x64xf32> to vector<4x64xf32>
    %57 = vector.shape_cast %54 : vector<4x64xf32> to vector<1x1x4x64xf32>
    tpu.vector_store %arg12[%c0_31, %c3, %c0_32, %c0_33], %57 {strides = array<i32>} : memref<1x4x4x64xf32, #tpu.memory_space<vmem>>, vector<1x1x4x64xf32>,
    %c0_34 = arith.constant 0 : index
    %c4 = arith.constant 4 : index
    %c0_35 = arith.constant 0 : index
    %58 = vector.load %arg2[%c0_34, %c4, %c0_35] : memref<1x16x1xf32, #tpu.memory_space<vmem>>, vector<1x4x1xf32>
    %59 = vector.shape_cast %58 : vector<1x4x1xf32> to vector<4x1xf32>
    %c4_36 = arith.constant 4 : index
    %c0_37 = arith.constant 0 : index
    %60 = vector.load %arg3[%c4_36, %c0_37] : memref<16x4xf32, #tpu.memory_space<vmem>>, vector<4x4xf32>
    %61 = vector.broadcast %59 : vector<4x1xf32> to vector<4x4xf32>
    %62 = arith.mulf %61, %60 : vector<4x4xf32>
    %63 = vector.broadcast %10 : vector<1x4xf32> to vector<4x4xf32>
    %64 = arith.mulf %62, %63 : vector<4x4xf32>
    %c0_38 = arith.constant 0 : index
    %c0_39 = arith.constant 0 : index
    %c0_40 = arith.constant 0 : index
    %65 = vector.load %arg5[%c0_38, %c0_39, %c0_40] : memref<1x4x1xf32, #tpu.memory_space<vmem>>, vector<1x4x1xf32>
    %66 = vector.shape_cast %65 : vector<1x4x1xf32> to vector<4x1xf32>
    %cst_41 = arith.constant 0.000000e+00 : f32
    %67 = vector.broadcast %cst_41 : f32 to vector<4x1xf32>
    %68 = arith.cmpf oge, %66, %67 : vector<4x1xf32>
    %cst_42 = arith.constant 1.000000e+00 : f32
    %cst_43 = arith.constant -1.000000e+00 : f32
    %69 = vector.broadcast %cst_42 : f32 to vector<4x1xf32>
    %70 = vector.broadcast %cst_43 : f32 to vector<4x1xf32>
    %71 = arith.select %68, %69, %70 : vector<4x1xi1>, vector<4x1xf32>
    %cst_44 = arith.constant 0.00999999977 : f32
    %72 = vector.broadcast %cst_44 : f32 to vector<4x1xf32>
    %73 = arith.mulf %72, %71 : vector<4x1xf32>
    %74 = arith.addf %66, %73 : vector<4x1xf32>
    %cst_45 = arith.constant 1.000000e+00 : f32
    %75 = vector.broadcast %cst_45 : f32 to vector<4x1xf32>
    %76 = arith.divf %75, %74 : vector<4x1xf32>
    %77 = vector.broadcast %76 : vector<4x1xf32> to vector<4x4xf32>
    %78 = arith.mulf %64, %77 : vector<4x4xf32>
    %c0_46 = arith.constant 0 : index
    %c0_47 = arith.constant 0 : index
    %c0_48 = arith.constant 0 : index
    %79 = vector.load %arg8[%c0_46, %c0_47, %c0_48] : memref<1x4x16xf32, #tpu.memory_space<vmem>>, vector<1x4x16xf32>
    %80 = vector.shape_cast %79 : vector<1x4x16xf32> to vector<4x16xf32>
    %81 = vector.extract_strided_slice %78 {offsets = [0, 0], sizes = [4, 1], strides = [1, 1]} : vector<4x4xf32> to vector<4x1xf32>
    %82 = vector.broadcast %81 : vector<4x1xf32> to vector<4x16xf32>
    %83 = arith.mulf %82, %80 : vector<4x16xf32>
    %c0_49 = arith.constant 0 : index
    %c0_50 = arith.constant 0 : index
    %c0_51 = arith.constant 0 : index
    %c0_52 = arith.constant 0 : index
    %84 = vector.load %arg11[%c0_49, %c0_50, %c0_51, %c0_52] : memref<1x4x4x16xf32, #tpu.memory_space<vmem>>, vector<1x1x4x16xf32>
    %85 = vector.shape_cast %84 : vector<1x1x4x16xf32> to vector<4x16xf32>
    %86 = vector.shape_cast %83 : vector<4x16xf32> to vector<1x1x4x16xf32>
    tpu.vector_store %arg11[%c0_49, %c0_50, %c0_51, %c0_52], %86 {strides = array<i32>} : memref<1x4x4x16xf32, #tpu.memory_space<vmem>>, vector<1x1x4x16xf32>,
    %87 = vector.extract_strided_slice %78 {offsets = [0, 1], sizes = [4, 1], strides = [1, 1]} : vector<4x4xf32> to vector<4x1xf32>
    %88 = vector.broadcast %87 : vector<4x1xf32> to vector<4x16xf32>
    %89 = arith.mulf %88, %80 : vector<4x16xf32>
    %c0_53 = arith.constant 0 : index
    %c1_54 = arith.constant 1 : index
    %c0_55 = arith.constant 0 : index
    %c0_56 = arith.constant 0 : index
    %90 = vector.load %arg11[%c0_53, %c1_54, %c0_55, %c0_56] : memref<1x4x4x16xf32, #tpu.memory_space<vmem>>, vector<1x1x4x16xf32>
    %91 = vector.shape_cast %90 : vector<1x1x4x16xf32> to vector<4x16xf32>
    %92 = vector.shape_cast %89 : vector<4x16xf32> to vector<1x1x4x16xf32>
    tpu.vector_store %arg11[%c0_53, %c1_54, %c0_55, %c0_56], %92 {strides = array<i32>} : memref<1x4x4x16xf32, #tpu.memory_space<vmem>>, vector<1x1x4x16xf32>,
    %93 = vector.extract_strided_slice %78 {offsets = [0, 2], sizes = [4, 1], strides = [1, 1]} : vector<4x4xf32> to vector<4x1xf32>
    %94 = vector.broadcast %93 : vector<4x1xf32> to vector<4x16xf32>
    %95 = arith.mulf %94, %80 : vector<4x16xf32>
    %c0_57 = arith.constant 0 : index
    %c2_58 = arith.constant 2 : index
    %c0_59 = arith.constant 0 : index
    %c0_60 = arith.constant 0 : index
    %96 = vector.load %arg11[%c0_57, %c2_58, %c0_59, %c0_60] : memref<1x4x4x16xf32, #tpu.memory_space<vmem>>, vector<1x1x4x16xf32>
    %97 = vector.shape_cast %96 : vector<1x1x4x16xf32> to vector<4x16xf32>
    %98 = vector.shape_cast %95 : vector<4x16xf32> to vector<1x1x4x16xf32>
    tpu.vector_store %arg11[%c0_57, %c2_58, %c0_59, %c0_60], %98 {strides = array<i32>} : memref<1x4x4x16xf32, #tpu.memory_space<vmem>>, vector<1x1x4x16xf32>,
    %99 = vector.extract_strided_slice %78 {offsets = [0, 3], sizes = [4, 1], strides = [1, 1]} : vector<4x4xf32> to vector<4x1xf32>
    %100 = vector.broadcast %99 : vector<4x1xf32> to vector<4x16xf32>
    %101 = arith.mulf %100, %80 : vector<4x16xf32>
    %c0_61 = arith.constant 0 : index
    %c3_62 = arith.constant 3 : index
    %c0_63 = arith.constant 0 : index
    %c0_64 = arith.constant 0 : index
    %102 = vector.load %arg11[%c0_61, %c3_62, %c0_63, %c0_64] : memref<1x4x4x16xf32, #tpu.memory_space<vmem>>, vector<1x1x4x16xf32>
    %103 = vector.shape_cast %102 : vector<1x1x4x16xf32> to vector<4x16xf32>
    %104 = vector.shape_cast %101 : vector<4x16xf32> to vector<1x1x4x16xf32>
    tpu.vector_store %arg11[%c0_61, %c3_62, %c0_63, %c0_64], %104 {strides = array<i32>} : memref<1x4x4x16xf32, #tpu.memory_space<vmem>>, vector<1x1x4x16xf32>,
    %c0_65 = arith.constant 0 : index
    %c8 = arith.constant 8 : index
    %c0_66 = arith.constant 0 : index
    %105 = vector.load %arg2[%c0_65, %c8, %c0_66] : memref<1x16x1xf32, #tpu.memory_space<vmem>>, vector<1x8x1xf32>
    %106 = vector.shape_cast %105 : vector<1x8x1xf32> to vector<8x1xf32>
    %c8_67 = arith.constant 8 : index
    %c0_68 = arith.constant 0 : index
    %107 = vector.load %arg3[%c8_67, %c0_68] : memref<16x4xf32, #tpu.memory_space<vmem>>, vector<8x4xf32>
    %108 = vector.broadcast %106 : vector<8x1xf32> to vector<8x4xf32>
    %109 = arith.mulf %108, %107 : vector<8x4xf32>
    %110 = vector.broadcast %10 : vector<1x4xf32> to vector<8x4xf32>
    %111 = arith.mulf %109, %110 : vector<8x4xf32>
    %c0_69 = arith.constant 0 : index
    %c0_70 = arith.constant 0 : index
    %c0_71 = arith.constant 0 : index
    %112 = vector.load %arg4[%c0_69, %c0_70, %c0_71] : memref<1x8x1xf32, #tpu.memory_space<vmem>>, vector<1x8x1xf32>
    %113 = vector.shape_cast %112 : vector<1x8x1xf32> to vector<8x1xf32>
    %cst_72 = arith.constant 0.000000e+00 : f32
    %114 = vector.broadcast %cst_72 : f32 to vector<8x1xf32>
    %115 = arith.cmpf oge, %113, %114 : vector<8x1xf32>
    %cst_73 = arith.constant 1.000000e+00 : f32
    %cst_74 = arith.constant -1.000000e+00 : f32
    %116 = vector.broadcast %cst_73 : f32 to vector<8x1xf32>
    %117 = vector.broadcast %cst_74 : f32 to vector<8x1xf32>
    %118 = arith.select %115, %116, %117 : vector<8x1xi1>, vector<8x1xf32>
    %cst_75 = arith.constant 0.00999999977 : f32
    %119 = vector.broadcast %cst_75 : f32 to vector<8x1xf32>
    %120 = arith.mulf %119, %118 : vector<8x1xf32>
    %121 = arith.addf %113, %120 : vector<8x1xf32>
    %cst_76 = arith.constant 6.250000e-02 : f32
    %122 = vector.broadcast %cst_76 : f32 to vector<8x1xf32>
    %123 = arith.divf %122, %121 : vector<8x1xf32>
    %124 = vector.broadcast %123 : vector<8x1xf32> to vector<8x4xf32>
    %125 = arith.mulf %111, %124 : vector<8x4xf32>
    %c0_77 = arith.constant 0 : index
    %c0_78 = arith.constant 0 : index
    %c0_79 = arith.constant 0 : index
    %126 = vector.load %arg7[%c0_77, %c0_78, %c0_79] : memref<1x8x16xf32, #tpu.memory_space<vmem>>, vector<1x8x16xf32>
    %127 = vector.shape_cast %126 : vector<1x8x16xf32> to vector<8x16xf32>
    %128 = vector.extract_strided_slice %125 {offsets = [0, 0], sizes = [8, 1], strides = [1, 1]} : vector<8x4xf32> to vector<8x1xf32>
    %129 = vector.broadcast %128 : vector<8x1xf32> to vector<8x16xf32>
    %130 = arith.mulf %129, %127 : vector<8x16xf32>
    %c0_80 = arith.constant 0 : index
    %c0_81 = arith.constant 0 : index
    %c0_82 = arith.constant 0 : index
    %c0_83 = arith.constant 0 : index
    %131 = vector.load %arg10[%c0_80, %c0_81, %c0_82, %c0_83] : memref<1x4x8x16xf32, #tpu.memory_space<vmem>>, vector<1x1x8x16xf32>
    %132 = vector.shape_cast %131 : vector<1x1x8x16xf32> to vector<8x16xf32>
    %133 = vector.shape_cast %130 : vector<8x16xf32> to vector<1x1x8x16xf32>
    tpu.vector_store %arg10[%c0_80, %c0_81, %c0_82, %c0_83], %133 {strides = array<i32>} : memref<1x4x8x16xf32, #tpu.memory_space<vmem>>, vector<1x1x8x16xf32>,
    %134 = vector.extract_strided_slice %125 {offsets = [0, 1], sizes = [8, 1], strides = [1, 1]} : vector<8x4xf32> to vector<8x1xf32>
    %135 = vector.broadcast %134 : vector<8x1xf32> to vector<8x16xf32>
    %136 = arith.mulf %135, %127 : vector<8x16xf32>
    %c0_84 = arith.constant 0 : index
    %c1_85 = arith.constant 1 : index
    %c0_86 = arith.constant 0 : index
    %c0_87 = arith.constant 0 : index
    %137 = vector.load %arg10[%c0_84, %c1_85, %c0_86, %c0_87] : memref<1x4x8x16xf32, #tpu.memory_space<vmem>>, vector<1x1x8x16xf32>
    %138 = vector.shape_cast %137 : vector<1x1x8x16xf32> to vector<8x16xf32>
    %139 = vector.shape_cast %136 : vector<8x16xf32> to vector<1x1x8x16xf32>
    tpu.vector_store %arg10[%c0_84, %c1_85, %c0_86, %c0_87], %139 {strides = array<i32>} : memref<1x4x8x16xf32, #tpu.memory_space<vmem>>, vector<1x1x8x16xf32>,
    %140 = vector.extract_strided_slice %125 {offsets = [0, 2], sizes = [8, 1], strides = [1, 1]} : vector<8x4xf32> to vector<8x1xf32>
    %141 = vector.broadcast %140 : vector<8x1xf32> to vector<8x16xf32>
    %142 = arith.mulf %141, %127 : vector<8x16xf32>
    %c0_88 = arith.constant 0 : index
    %c2_89 = arith.constant 2 : index
    %c0_90 = arith.constant 0 : index
    %c0_91 = arith.constant 0 : index
    %143 = vector.load %arg10[%c0_88, %c2_89, %c0_90, %c0_91] : memref<1x4x8x16xf32, #tpu.memory_space<vmem>>, vector<1x1x8x16xf32>
    %144 = vector.shape_cast %143 : vector<1x1x8x16xf32> to vector<8x16xf32>
    %145 = vector.shape_cast %142 : vector<8x16xf32> to vector<1x1x8x16xf32>
    tpu.vector_store %arg10[%c0_88, %c2_89, %c0_90, %c0_91], %145 {strides = array<i32>} : memref<1x4x8x16xf32, #tpu.memory_space<vmem>>, vector<1x1x8x16xf32>,
    %146 = vector.extract_strided_slice %125 {offsets = [0, 3], sizes = [8, 1], strides = [1, 1]} : vector<8x4xf32> to vector<8x1xf32>
    %147 = vector.broadcast %146 : vector<8x1xf32> to vector<8x16xf32>
    %148 = arith.mulf %147, %127 : vector<8x16xf32>
    %c0_92 = arith.constant 0 : index
    %c3_93 = arith.constant 3 : index
    %c0_94 = arith.constant 0 : index
    %c0_95 = arith.constant 0 : index
    %149 = vector.load %arg10[%c0_92, %c3_93, %c0_94, %c0_95] : memref<1x4x8x16xf32, #tpu.memory_space<vmem>>, vector<1x1x8x16xf32>
    %150 = vector.shape_cast %149 : vector<1x1x8x16xf32> to vector<8x16xf32>
    %151 = vector.shape_cast %148 : vector<8x16xf32> to vector<1x1x8x16xf32>
    tpu.vector_store %arg10[%c0_92, %c3_93, %c0_94, %c0_95], %151 {strides = array<i32>} : memref<1x4x8x16xf32, #tpu.memory_space<vmem>>, vector<1x1x8x16xf32>,
    return
  }
  func.func @transform_0(%arg0: i32) -> (i32, i32, i32) {
    %c0_i32 = arith.constant 0 : i32
    %c0_i32_0 = arith.constant 0 : i32
    %c0_i32_1 = arith.constant 0 : i32
    return %arg0, %c0_i32, %c0_i32_0 : i32, i32, i32
  }
  func.func @transform_1(%arg0: i32) -> (i32, i32, i32) {
    %c0_i32 = arith.constant 0 : i32
    %c0_i32_0 = arith.constant 0 : i32
    %c0_i32_1 = arith.constant 0 : i32
    return %arg0, %c0_i32, %c0_i32_0 : i32, i32, i32
  }
  func.func @transform_2(%arg0: i32) -> (i32, i32) {
    %c0_i32 = arith.constant 0 : i32
    %c0_i32_0 = arith.constant 0 : i32
    %c0_i32_1 = arith.constant 0 : i32
    return %c0_i32, %c0_i32_0 : i32, i32
  }
  func.func @transform_3(%arg0: i32) -> (i32, i32, i32) {
    %c0_i32 = arith.constant 0 : i32
    %c0_i32_0 = arith.constant 0 : i32
    %c0_i32_1 = arith.constant 0 : i32
    return %arg0, %c0_i32, %c0_i32_0 : i32, i32, i32
  }
  func.func @transform_4(%arg0: i32) -> (i32, i32, i32) {
    %c0_i32 = arith.constant 0 : i32
    %c0_i32_0 = arith.constant 0 : i32
    %c0_i32_1 = arith.constant 0 : i32
    return %arg0, %c0_i32, %c0_i32_0 : i32, i32, i32
  }
  func.func @transform_5(%arg0: i32) -> (i32, i32, i32) {
    %c0_i32 = arith.constant 0 : i32
    %c0_i32_0 = arith.constant 0 : i32
    %c0_i32_1 = arith.constant 0 : i32
    return %arg0, %c0_i32, %c0_i32_0 : i32, i32, i32
  }
  func.func @transform_6(%arg0: i32) -> (i32, i32, i32) {
    %c0_i32 = arith.constant 0 : i32
    %c0_i32_0 = arith.constant 0 : i32
    %c0_i32_1 = arith.constant 0 : i32
    return %arg0, %c0_i32, %c0_i32_0 : i32, i32, i32
  }
  func.func @transform_7(%arg0: i32) -> (i32, i32, i32) {
    %c0_i32 = arith.constant 0 : i32
    %c0_i32_0 = arith.constant 0 : i32
    %c0_i32_1 = arith.constant 0 : i32
    return %arg0, %c0_i32, %c0_i32_0 : i32, i32, i32
  }
  func.func @transform_8(%arg0: i32) -> (i32, i32, i32) {
    %c0_i32 = arith.constant 0 : i32
    %c0_i32_0 = arith.constant 0 : i32
    %c0_i32_1 = arith.constant 0 : i32
    return %arg0, %c0_i32, %c0_i32_0 : i32, i32, i32
  }
  func.func @transform_9(%arg0: i32) -> (i32, i32, i32, i32) {
    %c0_i32 = arith.constant 0 : i32
    %c0_i32_0 = arith.constant 0 : i32
    %c0_i32_1 = arith.constant 0 : i32
    %c0_i32_2 = arith.constant 0 : i32
    return %arg0, %c0_i32, %c0_i32_0, %c0_i32_1 : i32, i32, i32, i32
  }
  func.func @transform_10(%arg0: i32) -> (i32, i32, i32, i32) {
    %c0_i32 = arith.constant 0 : i32
    %c0_i32_0 = arith.constant 0 : i32
    %c0_i32_1 = arith.constant 0 : i32
    %c0_i32_2 = arith.constant 0 : i32
    return %arg0, %c0_i32, %c0_i32_0, %c0_i32_1 : i32, i32, i32, i32
  }
  func.func @transform_11(%arg0: i32) -> (i32, i32, i32, i32) {
    %c0_i32 = arith.constant 0 : i32
    %c0_i32_0 = arith.constant 0 : i32
    %c0_i32_1 = arith.constant 0 : i32
    %c0_i32_2 = arith.constant 0 : i32
    return %arg0, %c0_i32, %c0_i32_0, %c0_i32_1 : i32, i32, i32, i32
  }
}

</mosaic_0001>

<bundles_post_ra>
// kernel: tpu_custom_call.1
= control target key start
LH: loop header
LB: loop body
LE: loop exit
PB: predicated region body
PF: predicated region fallthrough
CT: control target
= control target key end

     0   :  { %s1550_s0 = inlined_call_operand.vmem [shape: f32[2,1,4], index: 0, kind: input, shape index: {}]   ;;  %s1551_s1 = inlined_call_operand.vmem [shape: f32[2,16,1], index: 1, kind: input, shape index: {}]   ;;  %s1552_s2 = inlined_call_operand.vmem [shape: f32[16,4], index: 2, kind: input, shape index: {}]   ;;  %s1553_s3 = inlined_call_operand.vmem [shape: f32[2,8,1], index: 3, kind: input, shape index: {}]   ;;  %s1554_s4 = inlined_call_operand.vmem [shape: f32[2,4,1], index: 4, kind: input, shape index: {}]   ;;  %s1555_s5 = inlined_call_operand.vmem [shape: f32[2,4,1], index: 5, kind: input, shape index: {}]   ;;  %s1556_s6 = inlined_call_operand.vmem [shape: f32[2,8,16], index: 6, kind: input, shape index: {}]   ;;  %s1557_s7 = inlined_call_operand.vmem [shape: f32[2,4,16], index: 7, kind: input, shape index: {}]   ;;  %s1558_s8 = inlined_call_operand.vmem [shape: f32[2,4,64], index: 8, kind: input, shape index: {}]   ;;  %s1559_s9 = inlined_call_operand.hbm [shape: f32[2,4,8,16], index: 9, kind: output, shape index: {0}]   ;;  %s1560_s10 = inlined_call_operand.hbm [shape: f32[2,4,4,16], index: 10, kind: output, shape index: {1}]   ;;  %s1561_s11 = inlined_call_operand.hbm [shape: f32[2,4,4,64], index: 11, kind: output, shape index: {2}]  }
   0x1   :  { %1567 = sst [smem:[#allocation13_spill]] %s1550_s0 }
   0x2   :  { %1568 = sst [smem:[#allocation14_spill]] %s1551_s1 }
   0x3   :  { %1569 = sst [smem:[#allocation15_spill]] %s1552_s2 }
   0x4   :  { %17 = vsyncpa [#allocation3], 0 }
   0x5   :  { %19 = vsyncpa [#allocation3 + $0x1], 0 }
   0x6   :  { %20 = vsyncpa [#allocation5], 0 }
   0x7   :  { %22 = vsyncpa [#allocation5 + $0x1], 0  ;;  %s1316_s17 = smov 0   ;;  %s1318_s18 = smov 0  }
   0x8   :  { %s1320_s19 = smov 0   ;;  %s1322_s20 = smov 0  }
   0x9 LB: > { %1570 = sst [smem:[#allocation9_spill]] %s1241_s19  ;;  %s1337_s21 = sadd.s32 4294967295, %s1245_s20   ;;  %s1245_s20 = sphi %s1322_s20, %s1583_s20   ;;  %s1241_s19 = sphi %s1320_s19, %s1585_s19   ;;  %s1237_s18 = sphi %s1318_s18, %s1587_s18   ;;  %s1233_s17 = sphi %s1316_s17, %s1586_s17  }
   0xa   : > { %s1562_s22 = sadd.s32 4294967294, %s1245_s20   ;;  %s1341_s23 = sadd.s32 1, %s1245_s20  }
   0xb   : > { %1571 = sst [smem:[#allocation10_spill]] %s1341_s23  ;;  %s264_s24 = sadd.s32 1, %s1241_s19 }
   0xc   : > { %s261_s25 = ssub.s32 %s1245_s20, %s1341_s23  ;;  %p274_p0 = scmp.ne.s32.totalorder %s1241_s19, %s1237_s18 }
   0xd   : > { %p262_p1 = scmp.eq.s32.totalorder %s261_s25, 0  ;;  %p275_p2 = scmp.eq.s32.totalorder %s1337_s21, 1 }
   0xe   : > { %p280_p3 = scmp.ne.s32.totalorder %s1237_s18, %s1233_s17  ;;  %p281_p4 = scmp.eq.s32.totalorder %s1562_s22, 1 }
   0xf   : > { %s1354_s26 = scalar_select %p262_p1, %s1241_s19, %s264_s24  }
  0x10   : > { %p1356_p5 = por %p275_p2, %p274_p0  ;;  %p1360_p6 = por %p281_p4, %p280_p3 }
  0x11   : > { %1572 = sst [smem:[#allocation11_spill]] %s1354_s26  ;;  %p1006_p7 = scmp.ge.s32.totalorder %s1245_s20, 1 }
  0x12   : > { %s1574_s28 = scalar_select %p1360_p6, 1, 0 }
  0x13   : > { %p410_p8 = scmp.lt.s32.totalorder %s1245_s20, 3 }
  0x14   : > { %1575 = sst [smem:[#allocation12_spill]] %s1574_s28 }
  0x15   : > { %p411_p9 = pnand %p1006_p7, %p410_p8 }
  0x16   : > { %p487_p10 = scmp.lt.s32.totalorder (!%p411_p9), %s1337_s21, 1  ;;  %s1576_s1 = sld [smem:[#allocation14_spill]] (!%p411_p9) }
  0x17   : > { %414 = sbr.rel (%p411_p9) target bundleno = 351 (0x15f), region = 56  ;;  %s1579_s0 = sld [smem:[#allocation13_spill]] (!%p411_p9) }
  0x18   : > { %s1580_s2 = sld [smem:[#allocation15_spill]] (!%p411_p9)  ;;  %s1421_s13 = sand.u32 (!%p411_p9), 1, %s1237_s18  }
  0x19   : > { %s1007_s19 = sshll.u32 (!%p411_p9), %s1421_s13, 5 }
  0x1c   : > { %v1247_v0 = vmov 0   ;;  %s1370_s29 = scalar_select %p487_p10, %s1337_s21, 1  ;;  %v1248_v6 = vmov -1.0   ;;  %v1249_v55 = vmov 2   ;;  %v1250_v56 = vmov 3  }
  0x1d   : > { %1100 = vset.pattern.permute.xlu0 %v1247_v0  ;;  %1102 = vset.pattern.permute.xlu1 %v1247_v0 }
  0x1e   : > { %1101 = vset.pattern.permute.xlu2 %v1247_v0  ;;  %s1038_s30 = sshll.u32 %s1370_s29, 4  ;;  %s1012_s12 = sshll.u32 %s1370_s29, 3 }
  0x1f   : > { %s494_s15 = scalar_lea.vmem %s1576_s1, %s1038_s30  ;;  %s1379_s16 = sshll.u32 %s1370_s29, 2 }
  0x20   : > { %v539_v1 = vld [vmem:[%s494_s15] sm:$0xf]  ;;  %s506_s22 = scalar_lea.vmem %s1555_s5, %s1379_s16  ;;  %s502_s23 = scalar_lea.vmem %s1554_s4, %s1379_s16  ;;  %v607_v4 = vld [vmem:[%s494_s15 + $0x4] sm:$0xf]  ;;  %v672_v16 = vld [vmem:[%s494_s15 + $0x8] sm:$0xff] }
  0x21   : > { %543 = vperm.xlu0 %1100, %v539_v1   ;;  %v551_v2 = vld [vmem:[%s506_s22] sm:$0xf]  ;;  %s498_s30 = scalar_lea.vmem %s1553_s3, %s1012_s12  ;;  %611 = vperm.xlu2 %1101, %v607_v4   ;;  %s518_s22 = scalar_lea.vmem %s1558_s8, %s1379_s16 }
  0x22   : > { %v616_v3 = vld [vmem:[%s502_s23] sm:$0xf]  ;;  %vm552_vm0 = vcmp.ge.f32.partialorder %v551_v2, 0.0  ;;  %s489_s23 = scalar_lea.vmem %s1579_s0, %s1370_s29  ;;  %s514_s15 = scalar_lea.vmem %s1557_s7, %s1379_s16 }
  0x23   : > { %vm617_vm1 = vcmp.ge.f32.partialorder %v616_v3, 0.0  ;;  %v681_v5 = vld [vmem:[%s498_s30] sm:$0xff]  ;;  %v553_v7 = vsel %vm552_vm0, 1.0, %v1248_v6  ;;  %s510_s16 = scalar_lea.vmem %s1556_s6, %s1012_s12  ;;  %s1455_s29 = scalar_lea.vmem [#allocation2], %s1007_s19 }
  0x24   : > { %v618_v8 = vsel %vm617_vm1, 1.0, %v1248_v6  ;;  %vm682_vm2 = vcmp.ge.f32.partialorder %v681_v5, 0.0  ;;  %v554_v9 = vmul.f32 0.01, %v553_v7  ;;  %v519_v49 = vld [vmem:[%s489_s23] sm:$0x1] }
  0x25   : > { %v619_v10 = vmul.f32 0.01, %v618_v8  ;;  %v683_v11 = vsel %vm682_vm2, 1.0, %v1248_v6  ;;  %vm520_vm15 = vcmp.ge.f32.partialorder %v519_v49, 0.0  ;;  %v608_v8 = vld [vmem:[%s1580_s2 + $0x4] sm:$0xf] }
  0x26   : > { %v684_v12 = vmul.f32 0.01, %v683_v11  ;;  %v555_v13 = vadd.f32 %v554_v9, %v551_v2  ;;  %v521_v50 = vsel %vm520_vm15, 1.0, %v1248_v6  ;;  %v673_v9 = vld [vmem:[%s1580_s2 + $0x8] sm:$0xff]  ;;  %s1008_s23 = sshll.u32 %s1421_s13, 4  ;;  %s1040_s12 = sshll.u32 %s1337_s21, 4 }
  0x27   : > { %v620_v14 = vadd.f32 %v619_v10, %v616_v3  ;;  %v522_v51 = vmul.f32 0.01, %v521_v50  ;;  %s1428_s26 = scalar_lea.vmem [#allocation6], %s1008_s23  ;;  %s1436_s24 = scalar_lea.vmem [#allocation4], %s1008_s23 }
  0x28   : > { %v685_v15 = vadd.f32 %v684_v12, %v681_v5  ;;  %1115 = vrcp.f32 %v555_v13  ;;  %vm561_vm3 = vweird.f32 %v555_v13  ;;  %v567_v21 = vand.u32 2147483648, %v555_v13  ;;  %v540_v5 = vld [vmem:[%s1580_s2] sm:$0xf]  ;;  %s776_s28 = scalar_lea.hbm %s1560_s10, %s1040_s12  ;;  %s777_s14 = sshll.u32 %s1436_s24, 4  ;;  %s778_s14 = int_to_ptr.vmem [resolvable:$true] %s777_s14 }
  0x29   : > { %1117 = vrcp.f32 %v620_v14  ;;  %676 = vperm.xlu2 %1101, %v672_v16   ;;  %v565_v24 = vand.u32 2147483647, %v555_v13  ;;  %vm626_vm8 = vweird.f32 %v620_v14  ;;  %v630_v36 = vand.u32 2147483647, %v620_v14  ;;  %s793_s30 = scalar_lea.hbm %s1561_s11, %s1040_s12  ;;  %s779_s19 = sshll.u32 %s776_s28, 4  ;;  %s780_s19 = int_to_ptr.hbm [resolvable:$true] %s779_s19 }
  0x2a   : > { %1119 = vrcp.f32 %v685_v15  ;;  %vm691_vm5 = vweird.f32 %v685_v15  ;;  %v697_v27 = vand.u32 2147483648, %v685_v15  ;;  %v695_v30 = vand.u32 2147483647, %v685_v15  ;;  %s794_s0 = sshll.u32 %s1428_s26, 4  ;;  %s796_s1 = sshll.u32 %s793_s30, 4  ;;  %s1476_s0 = int_to_ptr.vmem [resolvable:$true] %s794_s0  ;;  %s1478_s1 = int_to_ptr.hbm [resolvable:$true] %s796_s1 }
  0x2b   : > { %v568_v32 = vor.u32 1.1754944e-38, %v567_v21  ;;  %vm566_vm9 = vcmp.eq.f32.partialorder %v565_v24, 8.507059e+37  ;;  %v632_v37 = vand.u32 2147483648, %v620_v14  ;;  %vm631_vm14 = vcmp.eq.f32.partialorder %v630_v36, 8.507059e+37  ;;  %s1137_s23 = sshra.s32 %s780_s19, 4  ;;  %s1138_s23 = int_to_ptr.hbm [resolvable:$true] %s1137_s23 }
  0x2c   : > { %v698_v38 = vor.u32 1.1754944e-38, %v697_v27  ;;  %vm696_vm12 = vcmp.eq.f32.partialorder %v695_v30, 8.507059e+37  ;;  %v523_v52 = vadd.f32 %v522_v51, %v519_v49  ;;  %s1139_s12 = scalar_lea.hbm %s1138_s23, 16  ;;  %p1144_p0 = scmp.lt.s32.totalorder %s1138_s23, %s1560_s10 }
  0x2d   : > { %v633_v44 = vor.u32 1.1754944e-38, %v632_v37  ;;  %p1140_p11 = scmp.ne.s32.totalorder %s1138_s23, %s1139_s12 }
  0x2e   : > { %v1116_v17 = vpop.eup %1115  ;;  %1121 = vrcp.f32 %v523_v52  ;;  %vm529_vm0 = vweird.f32 %v523_v52  ;;  %v535_v59 = vand.u32 2147483648, %v523_v52  ;;  %v533_v61 = vand.u32 2147483647, %v523_v52 }
  0x2f   : > { %v1118_v18 = vpop.eup %1117  ;;  %v557_v19 = vmul.f32 %v1116_v17, %v555_v13  ;;  %vm562_vm4 = vweird.f32 %v1116_v17  ;;  %p1141_p12 = pnand %p1140_p11, %p1356_p5 }
  0x30   : > { %v1120_v20 = vpop.eup %1119  ;;  %v622_v22 = vmul.f32 %v1118_v18, %v620_v14  ;;  %vm1397_vm7 = vmor %vm561_vm3, %vm562_vm4  ;;  %vm627_vm10 = vweird.f32 %v1118_v18  ;;  %v536_v62 = vor.u32 1.1754944e-38, %v535_v59  ;;  %vm534_vm3 = vcmp.eq.f32.partialorder %v533_v61, 8.507059e+37 }
  0x31   : > { %v558_v23 = vsub.f32 1.0, %v557_v19  ;;  %v687_v25 = vmul.f32 %v1120_v20, %v685_v15  ;;  %vm692_vm6 = vweird.f32 %v1120_v20  ;;  %vm628_vm13 = vmor %vm626_vm8, %vm627_vm10  ;;  %1104 = vset.pattern.permute.xlu2 %v1249_v55  ;;  %vm584_vm4 = vcmask 519168   ;;  %p1142_p13 = pneg %p1141_p12 }
  0x32   : > { %v623_v26 = vsub.f32 1.0, %v622_v22  ;;  %vm693_vm11 = vmor %vm691_vm5, %vm692_vm6  ;;  %v1251_v22 = vmov 1   ;;  %vm649_vm5 = vcmask 125952   ;;  %vm714_vm6 = vcmask 130048  }
  0x33   : > { %v559_v28 = vmul.f32 %v1116_v17, %v558_v23  ;;  %v688_v29 = vsub.f32 1.0, %v687_v25  ;;  %v642_v25 = vld [vmem:[%s514_s15] sm:$0xf]  ;;  %s1143_s15 = scalar_lea.hbm %s1560_s10, 32 }
  0x34   : > { %v624_v33 = vmul.f32 %v1118_v18, %v623_v26  ;;  %v1122_v53 = vpop.eup %1121  ;;  %p1145_p1 = scmp.lt.s32.totalorder %s1143_s15, %s1139_s12 }
  0x35   : > { %v560_v34 = vadd.f32 %v1116_v17, %v559_v28  ;;  %v689_v35 = vmul.f32 %v1120_v20, %v688_v29  ;;  %v525_v54 = vmul.f32 %v1122_v53, %v523_v52  ;;  %vm530_vm1 = vweird.f32 %v1122_v53 }
  0x36   : > { %v625_v40 = vadd.f32 %v1118_v18, %v624_v33  ;;  %vm531_vm2 = vmor %vm529_vm0, %vm530_vm1  ;;  %v1448_v33 = vld [vmem:[%s510_s16] sm:$0xff]  ;;  %s742_s16 = sand.u32 1, %s1337_s21   ;;  %p1146_p2 = por %p1145_p1, %p1144_p0 }
  0x37   : > { %v564_v39 = vsel %vm1397_vm7, %v1116_v17, %v560_v34  ;;  %v690_v41 = vadd.f32 %v1120_v20, %v689_v35  ;;  %v526_v57 = vsub.f32 1.0, %v525_v54 }
  0x38   : > { %v569_v42 = vsel %vm566_vm9, %v568_v32, %v564_v39  ;;  %v629_v46 = vsel %vm628_vm13, %v1118_v18, %v625_v40  ;;  %p1147_p3 = pnand %p1146_p2, %p1142_p13 }
  0x39   : > { %573 = vperm.xlu0 %1100, %v569_v42   ;;  %v694_v43 = vsel %vm693_vm11, %v1120_v20, %v690_v41  ;;  %v634_v48 = vsel %vm631_vm14, %v633_v44, %v629_v46  ;;  %v527_v58 = vmul.f32 %v1122_v53, %v526_v57 }
  0x3a   : > { %v699_v45 = vsel %vm696_vm12, %v698_v38, %v694_v43 }
  0x3b   : > { %v700_v47 = vmul.f32 0.0625, %v699_v45  ;;  %v528_v60 = vadd.f32 %v1122_v53, %v527_v58 }
  0x3d   : > { %703 = vperm.xlu1 %1102, %v700_v47   ;;  %v532_v63 = vsel %vm531_vm2, %v1122_v53, %v528_v60 }
  0x3e   : > { %v537_v1 = vsel %vm534_vm3, %v536_v62, %v532_v63 }
  0x3f   : > { %v538_v4 = vmul.f32 %v537_v1, %v519_v49 }
  0x41   : > { %638 = vperm.xlu0 %1100, %v634_v48   ;;  %v548_v7 = vperm.slane %v538_v4, 0 }
  0x49   : > { %1105 = vset.pattern.permute.xlu0 %v1250_v56 }
  0x7b   : > { %v612_v3 = vpop.permute.xlu2 %611 }
  0x7c   : > { %v614_v14 = vmul.f32 %v612_v3, %v608_v8 }
  0x7e   : > { %v615_v16 = vmul.f32 %v614_v14, %v548_v7 }
  0x83   : > { %v677_v10 = vpop.permute.xlu2 %676 }
  0x84   : > { %v679_v15 = vmul.f32 %v677_v10, %v673_v9 }
  0x86   : > { %v680_v17 = vmul.f32 %v679_v15, %v548_v7 }
  0x93   : > { %v544_v2 = vpop.permute.xlu0 %543 }
  0x94   : > { %v546_v6 = vmul.f32 %v544_v2, %v540_v5 }
  0x96   : > { %v550_v11 = vmul.f32 %v548_v7, %v546_v6 }
  0xab   : > { %v574_v12 = vpop.permute.xlu0 %573 }
  0xac   : > { %v576_v13 = vmul.f32 %v574_v12, %v550_v11 }
  0xae   : > { %601 = vperm.xlu0 %1105, %v576_v13   ;;  %594 = vperm.xlu2 %1104, %v576_v13  }
  0xaf   : > { %580 = vperm.xlu1 %1102, %v576_v13   ;;  %v704_v18 = vpop.permute.xlu1 %703 }
  0xb0   : > { %v706_v21 = vmul.f32 %v704_v18, %v680_v17 }
  0xb3   : > { %v639_v19 = vpop.permute.xlu0 %638 }
  0xb4   : > { %v641_v20 = vmul.f32 %v639_v19, %v615_v16 }
  0xb6   : > { %1107 = vset.pattern.permute.xlu2 %v1251_v22  ;;  %1110 = vset.pattern.permute.xlu0 %v1247_v0 }
  0xb7   : > { %1103 = vset.pattern.permute.xlu1 %v1251_v22  ;;  %652 = vperm.xlu2 %1107, %v641_v20  }
  0xb8   : > { %587 = vperm.xlu1 %1103, %v576_v13   ;;  %710 = vperm.xlu0 %1110, %v706_v21  }
  0xbf   : > { %1109 = vset.pattern.permute.xlu2 %v1250_v56 }
  0xc0   : > { %1106 = vset.pattern.permute.xlu1 %v1247_v0  ;;  %666 = vperm.xlu2 %1109, %v641_v20   ;;  %v577_v0 = vld [vmem:[%s518_s22] sm:$0xf]  ;;  %s1482_s22 = scalar_lea.sflag [#allocation5], %s742_s16 }
  0xc1   : > { %645 = vperm.xlu1 %1106, %v641_v20   ;;  %1114 = vset.pattern.permute.xlu0 %v1250_v56 }
  0xc8   : > { %1112 = vset.pattern.permute.xlu2 %v1249_v55 }
  0xc9   : > { %1108 = vset.pattern.permute.xlu1 %v1249_v55  ;;  %724 = vperm.xlu2 %1112, %v706_v21  }
  0xca   : > { %659 = vperm.xlu1 %1108, %v641_v20  }
  0xd2   : > { %1111 = vset.pattern.permute.xlu1 %v1251_v22 }
  0xd3   : > { %717 = vperm.xlu1 %1111, %v706_v21  }
  0xdb   : > { %1113 = vset.pattern.permute.xlu1 %v1250_v56 }
  0xdc   : > { %731 = vperm.xlu1 %1113, %v706_v21  }
 0x108   : > { %v595_v23 = vpop.permute.xlu2 %594 }
 0x109   : > { %v597_v24 = vmul.f32 %v595_v23, %v577_v0 }
 0x10b   : > { %1019 = vst.msk [vmem:[%s1428_s26 + $0x8] sm:$0xf] %vm584_vm4, %v597_v24 }
 0x111   : > { %v653_v26 = vpop.permute.xlu2 %652 }
 0x112   : > { %v655_v27 = vmul.f32 %v653_v26, %v642_v25 }
 0x114   : > { %1021 = vst.msk [vmem:[%s1436_s24 + $0x4] sm:$0xf] %vm649_vm5, %v655_v27 }
 0x11a   : > { %v667_v28 = vpop.permute.xlu2 %666 }
 0x11b   : > { %v669_v29 = vmul.f32 %v667_v28, %v642_v25 }
 0x11d   : > { %1023 = vst.msk [vmem:[%s1436_s24 + $0xc] sm:$0xf] %vm649_vm5, %v669_v29 }
 0x120   : > { %v602_v30 = vpop.permute.xlu0 %601 }
 0x121   : > { %v604_v31 = vmul.f32 %v602_v30, %v577_v0  ;;  %v581_v32 = vpop.permute.xlu1 %580 }
 0x122   : > { %v583_v34 = vmul.f32 %v581_v32, %v577_v0 }
 0x123   : > { %1020 = vst.msk [vmem:[%s1428_s26 + $0xc] sm:$0xf] %vm584_vm4, %v604_v31  ;;  %v725_v35 = vpop.permute.xlu2 %724 }
 0x124   : > { %585 = vst.msk [vmem:[%s1428_s26] sm:$0xf] %vm584_vm4, %v583_v34  ;;  %v727_v36 = vmul.f32 %v725_v35, %v1448_v33 }
 0x126   : > { %1025 = vst.msk [vmem:[%s1455_s29 + $0x10] sm:$0xff] %vm714_vm6, %v727_v36 }
 0x12a   : > { %v588_v37 = vpop.permute.xlu1 %587  ;;  %v711_v38 = vpop.permute.xlu0 %710 }
 0x12b   : > { %v590_v39 = vmul.f32 %v588_v37, %v577_v0  ;;  %v713_v40 = vmul.f32 %v711_v38, %v1448_v33 }
 0x12d   : > { %1018 = vst.msk [vmem:[%s1428_s26 + $0x4] sm:$0xf] %vm584_vm4, %v590_v39 }
 0x12e   : > { %715 = vst.msk [vmem:[%s1455_s29] sm:$0xff] %vm714_vm6, %v713_v40 }
 0x133   : > { %v646_v41 = vpop.permute.xlu1 %645 }
 0x134   : > { %v648_v42 = vmul.f32 %v646_v41, %v642_v25 }
 0x136   : > { %650 = vst.msk [vmem:[%s1436_s24] sm:$0xf] %vm649_vm5, %v648_v42 }
 0x13c   : > { %v660_v43 = vpop.permute.xlu1 %659 }
 0x13d   : > { %v662_v44 = vmul.f32 %v660_v43, %v642_v25 }
 0x13f   : > { %1022 = vst.msk [vmem:[%s1436_s24 + $0x8] sm:$0xf] %vm649_vm5, %v662_v44 }
 0x140   : > { %1150 = shalt.err (!%p1147_p3)
}
 0x141   : > { %s1252_s24 = smov 64   ;;  %s1253_s16 = smov 4  }
 0x142   : > { %1043 = dma.vmem_to_hbm [thread:$0]  (%p1356_p5), %s778_s14, 256, %s780_s19, %s1482_s22, %s1252_s24, %s1252_s24, %s1253_s16  }
 0x143   : > { %s1165_s2 = sshra.s32 %s1478_s1, 4  ;;  %s1171_s28 = scalar_lea.hbm %s1561_s11, 32  ;;  %s1166_s2 = int_to_ptr.hbm [resolvable:$true] %s1165_s2 }
 0x144   : > { %s1167_s26 = scalar_lea.hbm %s1166_s2, 16  ;;  %p1172_p9 = scmp.lt.s32.totalorder %s1166_s2, %s1561_s11 }
 0x145   : > { %p1168_p4 = scmp.ne.s32.totalorder %s1166_s2, %s1167_s26  ;;  %p1173_p10 = scmp.lt.s32.totalorder %s1171_s28, %s1167_s26 }
 0x147   : > { %p1169_p7 = pnand %p1168_p4, %p1356_p5  ;;  %p1174_p11 = por %p1173_p10, %p1172_p9 }
 0x149   : > { %p1170_p8 = pneg %p1169_p7 }
 0x14b   : > { %p1175_p12 = pnand %p1174_p11, %p1170_p8 }
 0x14d   : > { %1178 = shalt.err (!%p1175_p12)
}
 0x14e   : > { %1044 = dma.vmem_to_hbm [thread:$0]  (%p1356_p5), %s1476_s0, 256, %s1478_s1, %s1482_s22, %s1252_s24, %s1252_s24, %s1253_s16   ;;  %v718_v45 = vpop.permute.xlu1 %717 }
 0x14f   : > { %s1039_s14 = sshll.u32 %s1337_s21, 5  ;;  %v720_v46 = vmul.f32 %v718_v45, %v1448_v33  ;;  %s760_s26 = sshll.u32 %s1455_s29, 4  ;;  %s761_s26 = int_to_ptr.vmem [resolvable:$true] %s760_s26 }
 0x150   : > { %s759_s30 = scalar_lea.hbm %s1559_s9, %s1039_s14  ;;  %s738_s0 = scalar_lea.sflag [#allocation3], %s1421_s13 }
 0x151   : > { %1024 = vst.msk [vmem:[%s1455_s29 + $0x8] sm:$0xff] %vm714_vm6, %v720_v46  ;;  %s762_s23 = sshll.u32 %s759_s30, 4  ;;  %s1199_s16 = scalar_lea.hbm %s1559_s9, 64  ;;  %s763_s23 = int_to_ptr.hbm [resolvable:$true] %s762_s23 }
 0x152   : > { %s1193_s1 = sshra.s32 %s763_s23, 4  ;;  %s1194_s1 = int_to_ptr.hbm [resolvable:$true] %s1193_s1 }
 0x153   : > { %s1195_s21 = scalar_lea.hbm %s1194_s1, 32  ;;  %p1200_p2 = scmp.lt.s32.totalorder %s1194_s1, %s1559_s9 }
 0x154   : > { %p1196_p13 = scmp.ne.s32.totalorder %s1194_s1, %s1195_s21  ;;  %p1201_p3 = scmp.lt.s32.totalorder %s1199_s16, %s1195_s21 }
 0x156   : > { %v732_v47 = vpop.permute.xlu1 %731  ;;  %p1197_p0 = pnand %p1196_p13, %p1356_p5  ;;  %p1202_p4 = por %p1201_p3, %p1200_p2 }
 0x157   : > { %v734_v48 = vmul.f32 %v732_v47, %v1448_v33 }
 0x158   : > { %p1198_p1 = pneg %p1197_p0 }
 0x159   : > { %1026 = vst.msk [vmem:[%s1455_s29 + $0x18] sm:$0xff] %vm714_vm6, %v734_v48 }
 0x15a   : > { %p1203_p7 = pnand %p1202_p4, %p1198_p1 }
 0x15c   : > { %1206 = shalt.err (!%p1203_p7)
}
 0x15d   : > { %s1254_s13 = smov 128   ;;  %s1255_s29 = smov 8  }
 0x15e   : > { %1042 = dma.vmem_to_hbm [thread:$0]  (%p1356_p5), %s761_s26, 512, %s763_s23, %s738_s0, %s1254_s13, %s1254_s13, %s1255_s29  }
 0x15f PF: > { %p1058_p8 = scmp.ge.s32.totalorder %s1245_s20, 2  ;;  %s811_s25 = sand.u32 1, %s1233_s17  }
 0x160   : > { %s812_s14 = scalar_lea.sflag [#allocation3], %s811_s25 }
 0x161   : > { %p1049_p9 = pnand %p1058_p8, %p1360_p6 }
 0x163   : > { %p1050_p10 = pneg %p1049_p9 }
 0x165   : > { %1224 = dma.done.wait (%p1050_p10), %s812_s14, 512  }
 0x166   : > { %1226 = vsyncadd (%p1050_p10), %s812_s14, 4294966784  ;;  %s1582_s2 = sadd.s32 4294967294, %s1245_s20  }
 0x167   : > { %s821_s19 = sand.u32 1, %s1582_s2  }
 0x168   : > { %s822_s30 = scalar_lea.sflag [#allocation5], %s821_s19 }
 0x169   : > { %1228 = dma.done.wait (%p1050_p10), %s822_s30, 512  }
 0x16a   : > { %1230 = vsyncadd (%p1050_p10), %s822_s30, 4294966784  ;;  %s1583_s20 = sld [smem:[#allocation10_spill]]  ;;  %s1586_s17 = smov %s1237_s18 }
 0x16b   : > { %s1584_s27 = sld [smem:[#allocation9_spill]] }
 0x16c   : > { %s1585_s19 = sld [smem:[#allocation11_spill]] }
 0x170   : > { %p25_p5 = scmp.ge.s32.totalorder %s1583_s20, 4  }
 0x171   : > { %s1587_s18 = smov %s1584_s27 }
 0x172   :  { %27 = sbr.rel (!%p25_p5) target bundleno = 9 (0x9), region = 153 }
 0x177   :  { %838 = vsyncpa [#allocation3], 1 }
 0x178   :  { %840 = vsyncpa [#allocation3 + $0x1], 1 }
 0x179   :  { %841 = vsyncpa [#allocation5], 1 }
 0x17a   :  { %843 = vsyncpa [#allocation5 + $0x1], 1 }

</bundles_post_ra>
